<compile_context>
chip_gen: v7x
topology: tpu7x:2x2x1
jax: 0.10.0
libtpu: 0.0.40
codegen_flags: <defaults>
</compile_context>

<pallas_src>
import jax
import jax.numpy as jnp
from jax.experimental import pallas as pl
from jax.experimental.pallas import tpu as pltpu


def _round_up(x: int, m: int) -> int:
    return ((x + m - 1) // m) * m


def _joint_prob_kernel(idx_ref, rew_hi_ref, rew_lo_ref, out_ref):
    """One N-tile.

    idx_ref:    (T, 4) int32  -- columns [idx1_l, idx2_l, idx1_r, idx2_r]
    rew_*_ref:  (A_pad, L_pad) f32 -- hi/lo split of the padded reward table
    out_ref:    (T, L_pad) f32 -- sigmoid(d_l) * sigmoid(d_r)
    """
    t = idx_ref.shape[0]
    a_pad = rew_hi_ref.shape[0]

    lane = jax.lax.broadcasted_iota(jnp.int32, (t, a_pad), 1)
    idx = idx_ref[...]                                  # (T, 4)

    def neg_logit(c1, c2):
        # (onehot(idx1) - onehot(idx2)) @ rew == rew[idx1] - rew[idx2] == -(r2 - r1)
        # Sign is flipped so no negation is needed before exp().
        diff = ((idx[:, c1:c1 + 1] == lane).astype(jnp.float32)
                - (idx[:, c2:c2 + 1] == lane).astype(jnp.float32))   # (T, A_pad)
        # hi/lo split keeps the gather exact on any MXU f32 pass configuration:
        # diff is {-1,0,1} (exact in bf16) and rew_hi is exactly bf16.
        return (jnp.dot(diff, rew_hi_ref[...], preferred_element_type=jnp.float32)
                + jnp.dot(diff, rew_lo_ref[...], preferred_element_type=jnp.float32))

    nd_l = neg_logit(0, 1)                              # r1_l - r2_l   (T, L_pad)
    nd_r = neg_logit(2, 3)                              # r1_r - r2_r
    # sigmoid(d_l) * sigmoid(d_r) = 1 / ((1 + exp(-d_l)) * (1 + exp(-d_r)))
    # Clamp before exp so extreme logits can't produce inf/NaN on hardware.
    e_l = jnp.exp(jnp.minimum(nd_l, 60.0))
    e_r = jnp.exp(jnp.minimum(nd_r, 60.0))
    out_ref[...] = 1.0 / ((1.0 + e_l) * (1.0 + e_r))


def multiloc_joint_likelihood_forward(
    states_l_n, actions_1_l_n, actions_2_l_n,
    states_r_n, actions_1_r_n, actions_2_r_n,
    rew_mdl, latent_logits, *, tile_n: int = 1024,
):
    """Pallas implementation of MultiLocRewardBasedJointLikelihoodModel.forward."""
    n = states_l_n.shape[0]
    n_action, latent_dim = rew_mdl.shape

    # --- wrapper-side index precompute: 4 streams packed into one (N, 4) ----
    def to_idx(a, s):
        return jnp.mod(a.astype(jnp.int32) - s.astype(jnp.int32), n_action)

    idx_all = jnp.stack(
        [to_idx(actions_1_l_n, states_l_n), to_idx(actions_2_l_n, states_l_n),
         to_idx(actions_1_r_n, states_r_n), to_idx(actions_2_r_n, states_r_n)],
        axis=1)                                                     # (N, 4)

    # --- tiling over N -------------------------------------------------------
    tile_n = _round_up(max(8, min(tile_n, _round_up(n, 8))), 8)
    n_pad = _round_up(n, tile_n)
    idx_all = jnp.pad(idx_all, ((0, n_pad - n), (0, 0)))            # (N_pad, 4)

    # --- lane-dense, zero-padded reward table + hi/lo split ------------------
    a_pad = max(128, _round_up(n_action, 128))
    l_pad = max(128, _round_up(latent_dim, 128))
    rew_f32 = jnp.zeros((a_pad, l_pad), jnp.float32)
    rew_f32 = rew_f32.at[:n_action, :latent_dim].set(rew_mdl.astype(jnp.float32))
    rew_hi = rew_f32.astype(jnp.bfloat16).astype(jnp.float32)       # exact in bf16
    rew_lo = rew_f32 - rew_hi                                       # tiny residual

    grid = (n_pad // tile_n,)
    prob_padded = pl.pallas_call(
        _joint_prob_kernel,
        out_shape=jax.ShapeDtypeStruct((n_pad, l_pad), jnp.float32),
        grid=grid,
        in_specs=[
            pl.BlockSpec((tile_n, 4), lambda i: (i, 0)),
            pl.BlockSpec((a_pad, l_pad), lambda i: (0, 0)),
            pl.BlockSpec((a_pad, l_pad), lambda i: (0, 0)),
        ],
        out_specs=pl.BlockSpec((tile_n, l_pad), lambda i: (i, 0)),
        compiler_params=pltpu.CompilerParams(
            dimension_semantics=("parallel",),
            vmem_limit_bytes=32 * 1024 * 1024,
        ),
    )(idx_all, rew_hi, rew_lo)

    prob_nl = prob_padded[:n, :latent_dim]

    # Hoisted out of the kernel (trivial XLA ops); keeps the kernel output
    # lane-dense instead of an (N, 1) masked store.
    latent_probs = jax.nn.softmax(latent_logits.astype(jnp.float32))
    prob_n = prob_nl @ latent_probs.reshape(-1, 1)
    return prob_n, prob_nl


def _reference_forward(s_l, a1_l, a2_l, s_r, a1_r, a2_r, rew_mdl, latent_logits):
    n_action = rew_mdl.shape[0]
    latent_probs = jax.nn.softmax(latent_logits)
    r1l = rew_mdl[jnp.mod(a1_l - s_l, n_action)]
    r2l = rew_mdl[jnp.mod(a2_l - s_l, n_action)]
    r1r = rew_mdl[jnp.mod(a1_r - s_r, n_action)]
    r2r = rew_mdl[jnp.mod(a2_r - s_r, n_action)]
    prob_nl = jax.nn.sigmoid(r2l - r1l) * jax.nn.sigmoid(r2r - r1r)
    prob_n = prob_nl @ latent_probs.reshape(-1, 1)
    return prob_n, prob_nl


def _make_inputs(key, n, n_state, n_action, latent_dim):
    ks = jax.random.split(key, 8)
    rew_mdl = jax.random.normal(ks[0], (n_action, latent_dim), dtype=jnp.float32)
    latent_logits = 0.1 * jax.random.normal(ks[1], (latent_dim,), dtype=jnp.float32)
    s_l = jax.random.randint(ks[2], (n,), 0, n_state, dtype=jnp.int32)
    a1_l = jax.random.randint(ks[3], (n,), 0, n_action, dtype=jnp.int32)
    a2_l = jax.random.randint(ks[4], (n,), 0, n_action, dtype=jnp.int32)
    s_r = jax.random.randint(ks[5], (n,), 0, n_state, dtype=jnp.int32)
    a1_r = jax.random.randint(ks[6], (n,), 0, n_action, dtype=jnp.int32)
    a2_r = jax.random.randint(ks[7], (n,), 0, n_action, dtype=jnp.int32)
    return (s_l, a1_l, a2_l, s_r, a1_r, a2_r), rew_mdl, latent_logits


if __name__ == "__main__":
    n_state, n_action, latent_dim = 16, 16, 32
    key = jax.random.PRNGKey(0)
    k_small, k_big = jax.random.split(key)

    # Case 1: tiny batch (single tile).
    idx_args, rew_mdl, latent_logits = _make_inputs(k_small, 8, n_state, n_action, latent_dim)
    prob_n, prob_nl = multiloc_joint_likelihood_forward(*idx_args, rew_mdl, latent_logits)
    jax.block_until_ready((prob_n, prob_nl))
    ref_n, ref_nl = _reference_forward(*idx_args, rew_mdl, latent_logits)
    assert prob_n.shape == (8, 1) and prob_nl.shape == (8, latent_dim)
    assert jnp.allclose(prob_nl, ref_nl, atol=1e-3), "prob_nl mismatch (small)"
    assert jnp.allclose(prob_n, ref_n, atol=1e-3), "prob_n mismatch (small)"

    # Case 2: multi-tile grid with N padding (exercises the pipelined path).
    idx_args2, rew_mdl2, latent_logits2 = _make_inputs(k_big, 300, n_state, n_action, latent_dim)
    prob_n2, prob_nl2 = multiloc_joint_likelihood_forward(
        *idx_args2, rew_mdl2, latent_logits2, tile_n=128)
    jax.block_until_ready((prob_n2, prob_nl2))
    ref_n2, ref_nl2 = _reference_forward(*idx_args2, rew_mdl2, latent_logits2)
    assert prob_n2.shape == (300, 1) and prob_nl2.shape == (300, latent_dim)
    assert jnp.allclose(prob_nl2, ref_nl2, atol=1e-3), "prob_nl mismatch (tiled)"
    assert jnp.allclose(prob_n2, ref_n2, atol=1e-3), "prob_n mismatch (tiled)"

    print("KERNEL_OK")
</pallas_src>

<mosaic_0001>
module attributes {stable_mosaic.version = 11 : i64} {
  func.func @_joint_prob_kernel(%arg0: i32, %arg1: memref<8x4xi32, #tpu.memory_space<vmem>>, %arg2: memref<128x128xf32, #tpu.memory_space<vmem>>, %arg3: memref<128x128xf32, #tpu.memory_space<vmem>>, %arg4: memref<8x128xf32, #tpu.memory_space<vmem>>) attributes {dimension_semantics = [#tpu.dimension_semantics<parallel>], iteration_bounds = array<i64: 1>, scalar_prefetch = 0 : i64, scratch_operands = 0 : i64, tpu.core_type = #tpu.core_type<tc>, window_params = [{transform_indices = @transform_0, window_bounds = array<i64: 8, 4>}, {pipeline_mode = #tpu.pipeline_mode<synchronous>, transform_indices = @transform_1, window_bounds = array<i64: 128, 128>}, {pipeline_mode = #tpu.pipeline_mode<synchronous>, transform_indices = @transform_2, window_bounds = array<i64: 128, 128>}, {transform_indices = @transform_3, window_bounds = array<i64: 8, 128>}]} {
    %0 = tpu.iota {dimensions = array<i32: 1>} : vector<8x128xi32>
    %c0 = arith.constant 0 : index
    %c0_0 = arith.constant 0 : index
    %1 = vector.load %arg1[%c0, %c0_0] : memref<8x4xi32, #tpu.memory_space<vmem>>, vector<8x4xi32>
    %2 = vector.extract_strided_slice %1 {offsets = [0, 0], sizes = [8, 1], strides = [1, 1]} : vector<8x4xi32> to vector<8x1xi32>
    %3 = vector.broadcast %2 : vector<8x1xi32> to vector<8x128xi32>
    %4 = arith.cmpi eq, %3, %0 : vector<8x128xi32>
    %5 = arith.extui %4 : vector<8x128xi1> to vector<8x128xi32>
    %6 = arith.sitofp %5 : vector<8x128xi32> to vector<8x128xf32>
    %7 = vector.extract_strided_slice %1 {offsets = [0, 1], sizes = [8, 1], strides = [1, 1]} : vector<8x4xi32> to vector<8x1xi32>
    %8 = vector.broadcast %7 : vector<8x1xi32> to vector<8x128xi32>
    %9 = arith.cmpi eq, %8, %0 : vector<8x128xi32>
    %10 = arith.extui %9 : vector<8x128xi1> to vector<8x128xi32>
    %11 = arith.sitofp %10 : vector<8x128xi32> to vector<8x128xf32>
    %12 = arith.subf %6, %11 : vector<8x128xf32>
    %c0_1 = arith.constant 0 : index
    %c0_2 = arith.constant 0 : index
    %13 = vector.load %arg2[%c0_1, %c0_2] : memref<128x128xf32, #tpu.memory_space<vmem>>, vector<128x128xf32>
    %cst = arith.constant dense<0.000000e+00> : vector<8x128xf32>
    %14 = tpu.matmul %12, %13, %cst {dimension_numbers = #tpu.dot_dimension_numbers<[1], [0], [0], [1], [0, 0, 1, 1], [], []>} : vector<8x128xf32>, vector<128x128xf32>, vector<8x128xf32> -> vector<8x128xf32>
    %c0_3 = arith.constant 0 : index
    %c0_4 = arith.constant 0 : index
    %15 = vector.load %arg3[%c0_3, %c0_4] : memref<128x128xf32, #tpu.memory_space<vmem>>, vector<128x128xf32>
    %cst_5 = arith.constant dense<0.000000e+00> : vector<8x128xf32>
    %16 = tpu.matmul %12, %15, %cst_5 {dimension_numbers = #tpu.dot_dimension_numbers<[1], [0], [0], [1], [0, 0, 1, 1], [], []>} : vector<8x128xf32>, vector<128x128xf32>, vector<8x128xf32> -> vector<8x128xf32>
    %17 = arith.addf %14, %16 : vector<8x128xf32>
    %18 = vector.extract_strided_slice %1 {offsets = [0, 2], sizes = [8, 1], strides = [1, 1]} : vector<8x4xi32> to vector<8x1xi32>
    %19 = vector.broadcast %18 : vector<8x1xi32> to vector<8x128xi32>
    %20 = arith.cmpi eq, %19, %0 : vector<8x128xi32>
    %21 = arith.extui %20 : vector<8x128xi1> to vector<8x128xi32>
    %22 = arith.sitofp %21 : vector<8x128xi32> to vector<8x128xf32>
    %23 = vector.extract_strided_slice %1 {offsets = [0, 3], sizes = [8, 1], strides = [1, 1]} : vector<8x4xi32> to vector<8x1xi32>
    %24 = vector.broadcast %23 : vector<8x1xi32> to vector<8x128xi32>
    %25 = arith.cmpi eq, %24, %0 : vector<8x128xi32>
    %26 = arith.extui %25 : vector<8x128xi1> to vector<8x128xi32>
    %27 = arith.sitofp %26 : vector<8x128xi32> to vector<8x128xf32>
    %28 = arith.subf %22, %27 : vector<8x128xf32>
    %c0_6 = arith.constant 0 : index
    %c0_7 = arith.constant 0 : index
    %29 = vector.load %arg2[%c0_6, %c0_7] : memref<128x128xf32, #tpu.memory_space<vmem>>, vector<128x128xf32>
    %cst_8 = arith.constant dense<0.000000e+00> : vector<8x128xf32>
    %30 = tpu.matmul %28, %29, %cst_8 {dimension_numbers = #tpu.dot_dimension_numbers<[1], [0], [0], [1], [0, 0, 1, 1], [], []>} : vector<8x128xf32>, vector<128x128xf32>, vector<8x128xf32> -> vector<8x128xf32>
    %c0_9 = arith.constant 0 : index
    %c0_10 = arith.constant 0 : index
    %31 = vector.load %arg3[%c0_9, %c0_10] : memref<128x128xf32, #tpu.memory_space<vmem>>, vector<128x128xf32>
    %cst_11 = arith.constant dense<0.000000e+00> : vector<8x128xf32>
    %32 = tpu.matmul %28, %31, %cst_11 {dimension_numbers = #tpu.dot_dimension_numbers<[1], [0], [0], [1], [0, 0, 1, 1], [], []>} : vector<8x128xf32>, vector<128x128xf32>, vector<8x128xf32> -> vector<8x128xf32>
    %33 = arith.addf %30, %32 : vector<8x128xf32>
    %cst_12 = arith.constant 6.000000e+01 : f32
    %34 = vector.broadcast %cst_12 : f32 to vector<8x128xf32>
    %35 = arith.minimumf %17, %34 : vector<8x128xf32>
    %36 = math.exp %35 : vector<8x128xf32>
    %cst_13 = arith.constant 6.000000e+01 : f32
    %37 = vector.broadcast %cst_13 : f32 to vector<8x128xf32>
    %38 = arith.minimumf %33, %37 : vector<8x128xf32>
    %39 = math.exp %38 : vector<8x128xf32>
    %cst_14 = arith.constant 1.000000e+00 : f32
    %40 = vector.broadcast %cst_14 : f32 to vector<8x128xf32>
    %41 = arith.addf %40, %36 : vector<8x128xf32>
    %cst_15 = arith.constant 1.000000e+00 : f32
    %42 = vector.broadcast %cst_15 : f32 to vector<8x128xf32>
    %43 = arith.addf %42, %39 : vector<8x128xf32>
    %44 = arith.mulf %41, %43 : vector<8x128xf32>
    %cst_16 = arith.constant 1.000000e+00 : f32
    %45 = vector.broadcast %cst_16 : f32 to vector<8x128xf32>
    %46 = arith.divf %45, %44 : vector<8x128xf32>
    %c0_17 = arith.constant 0 : index
    %c0_18 = arith.constant 0 : index
    %47 = vector.load %arg4[%c0_17, %c0_18] : memref<8x128xf32, #tpu.memory_space<vmem>>, vector<8x128xf32>
    tpu.vector_store %arg4[%c0_17, %c0_18], %46 {strides = array<i32>} : memref<8x128xf32, #tpu.memory_space<vmem>>, vector<8x128xf32>,
    return
  }
  func.func @transform_0(%arg0: i32) -> (i32, i32) {
    %c0_i32 = arith.constant 0 : i32
    %c0_i32_0 = arith.constant 0 : i32
    return %arg0, %c0_i32 : i32, i32
  }
  func.func @transform_1(%arg0: i32) -> (i32, i32) {
    %c0_i32 = arith.constant 0 : i32
    %c0_i32_0 = arith.constant 0 : i32
    %c0_i32_1 = arith.constant 0 : i32
    return %c0_i32, %c0_i32_0 : i32, i32
  }
  func.func @transform_2(%arg0: i32) -> (i32, i32) {
    %c0_i32 = arith.constant 0 : i32
    %c0_i32_0 = arith.constant 0 : i32
    %c0_i32_1 = arith.constant 0 : i32
    return %c0_i32, %c0_i32_0 : i32, i32
  }
  func.func @transform_3(%arg0: i32) -> (i32, i32) {
    %c0_i32 = arith.constant 0 : i32
    %c0_i32_0 = arith.constant 0 : i32
    return %arg0, %c0_i32 : i32, i32
  }
}

</mosaic_0001>

<bundles_post_ra>
// kernel: tpu_custom_call.1
= control target key start
LH: loop header
LB: loop body
LE: loop exit
PB: predicated region body
PF: predicated region fallthrough
CT: control target
= control target key end

     0   :  { %8 = vsyncpa [#allocation3], 0  ;;  %s934_s0 = inlined_call_operand.vmem [shape: s32[8,4], index: 0, kind: input, shape index: {}]   ;;  %s935_s1 = inlined_call_operand.hbm [shape: f32[128,128], index: 1, kind: input, shape index: {}]   ;;  %s936_s2 = inlined_call_operand.hbm [shape: f32[128,128], index: 2, kind: input, shape index: {}]   ;;  %s937_s3 = inlined_call_operand.hbm [shape: f32[8,128], index: 3, kind: output, shape index: {}]  }
   0x1   :  { %9 = vsyncpa [#allocation6], 0 }
   0x2   :  { %10 = vsyncpa [#allocation4], 0  ;;  %s819_s12 = smov [#allocation2]   ;;  %s747_s16 = scalar_lea.hbm %s935_s1, 2048 }
   0x3   :  { %s18_s13 = sshll.u32 %s819_s12, 4  ;;  %p748_p0 = scmp.ne.s32.totalorder %s935_s1, %s747_s16  ;;  %s19_s13 = int_to_ptr.vmem [resolvable:$true] %s18_s13 }
   0x4   :  { %p751_p1 = scmp.lt.u32.totalorder %s747_s16, %s935_s1 }
   0x6   :  { %p753_p2 = pnand %p751_p1, %p748_p0 }
   0x8   :  { %756 = shalt.err (!%p753_p2)
}
   0x9   :  { %s757_s21 = scalar_lea.vmem %s19_s13, 2048  ;;  %p762_p4 = scmp.lt.s32.totalorder %s19_s13, %s19_s13 }
   0xa   :  { %p758_p3 = scmp.ne.s32.totalorder %s19_s13, %s757_s21  ;;  %p763_p5 = scmp.lt.s32.totalorder %s757_s21, %s757_s21 }
   0xc   :  { %p764_p6 = por %p763_p5, %p762_p4 }
   0xe   :  { %p765_p7 = pnand %p764_p6, %p758_p3 }
  0x10   :  { %768 = shalt.err (!%p765_p7)
}
  0x11   :  { %s820_s22 = smov 128   ;;  %s821_s23 = smov 8  }
  0x12   :  { %24 = dma.hbm_to_vmem [thread:$0]  %s935_s1, 2048, %s19_s13, [#allocation3], %s820_s22, %s820_s22, %s821_s23  }
  0x13   :  { %s822_s26 = smov [#allocation5]   ;;  %s769_s30 = scalar_lea.hbm %s936_s2, 2048 }
  0x14   :  { %s30_s27 = sshll.u32 %s822_s26, 4  ;;  %p770_p8 = scmp.ne.s32.totalorder %s936_s2, %s769_s30  ;;  %s31_s27 = int_to_ptr.vmem [resolvable:$true] %s30_s27 }
  0x15   :  { %p773_p9 = scmp.lt.u32.totalorder %s769_s30, %s936_s2 }
  0x17   :  { %p775_p10 = pnand %p773_p9, %p770_p8 }
  0x19   :  { %778 = shalt.err (!%p775_p10)
}
  0x1a   :  { %s779_s8 = scalar_lea.vmem %s31_s27, 2048  ;;  %p784_p12 = scmp.lt.s32.totalorder %s31_s27, %s31_s27 }
  0x1b   :  { %p780_p11 = scmp.ne.s32.totalorder %s31_s27, %s779_s8  ;;  %p785_p13 = scmp.lt.s32.totalorder %s779_s8, %s779_s8 }
  0x1d   :  { %p786_p0 = por %p785_p13, %p784_p12 }
  0x1f   :  { %p787_p1 = pnand %p786_p0, %p780_p11 }
  0x21   :  { %790 = shalt.err (!%p787_p1)
}
  0x22   :  { %36 = dma.hbm_to_vmem [thread:$0]  %s936_s2, 2048, %s31_s27, [#allocation6], %s820_s22, %s820_s22, %s821_s23  }
  0x23   :  { %813 = dma.done.wait [#allocation3], 2048  }
  0x24   :  { %814 = vsyncadd [#allocation3], 4294965248 }
  0x25   :  { %815 = dma.done.wait [#allocation6], 2048  }
  0x26   :  { %816 = vsyncadd [#allocation6], 4294965248  ;;  %v823_v0 = vmov 2   ;;  %v824_v1 = vmov 0   ;;  %v825_v2 = vmov 0.0|0.0   ;;  %v45_v3 = vld [vmem:[%s934_s0] sm:$0xff]  ;;  %v43_v31 = vlaneseq }
  0x27   :  { %738 = vset.pattern.permute.xlu1 %v823_v0  ;;  %736 = vset.pattern.permute.xlu0 %v824_v1  ;;  %v75_v4 = vld [vmem:[#allocation5] sm:$0xff]  ;;  %v76_v5 = vld [vmem:[#allocation5 + $0x8] sm:$0xff]  ;;  %v77_v7 = vld [vmem:[#allocation5 + $0x10] sm:$0xff]  ;;  %v826_v12 = vmov 3   ;;  %v827_v13 = vmov 1   ;;  %vm828_vm0 = vmmov 0  }
  0x28   :  { %624 = vmatprep.subr.bf16.mxu0 %v825_v2  ;;  %672 = vmatprep.subr.bf16.mxu1 %v825_v2  ;;  %v625_v6 = vpack.c.bf16 %v76_v5, %v75_v4  ;;  %v78_v8 = vld [vmem:[#allocation5 + $0x18] sm:$0xff]  ;;  %v79_v10 = vld [vmem:[#allocation5 + $0x20] sm:$0xff]  ;;  %v80_v11 = vld [vmem:[#allocation5 + $0x28] sm:$0xff]  ;;  %v829_v17 = vmov 0.0   ;;  %v44_v32 = vand.u32 127, %v43_v31  ;;  %s830_s0 = smov [#allocation7]  }
  0x29   :  { %232 = vperm.xlu1 %738, %v45_v3   ;;  %47 = vperm.xlu0 %736, %v45_v3   ;;  %v628_v9 = vpack.c.bf16 %v78_v8, %v77_v7  ;;  %v631_v14 = vpack.c.bf16 %v80_v11, %v79_v10  ;;  %v81_v15 = vld [vmem:[#allocation5 + $0x30] sm:$0xff]  ;;  %v82_v16 = vld [vmem:[#allocation5 + $0x38] sm:$0xff]  ;;  %v83_v19 = vld [vmem:[#allocation5 + $0x40] sm:$0xff]  ;;  %s402_s2 = sshll.u32 %s830_s0, 4  ;;  %s403_s2 = int_to_ptr.vmem [resolvable:$true] %s402_s2 }
  0x2a   :  { %626 = vmatpush3.bf16.msra.mxu0 %v625_v6  ;;  %674 = vmatpush3.bf16.msra.mxu1 %v625_v6  ;;  %v634_v18 = vpack.c.bf16 %v82_v16, %v81_v15  ;;  %v84_v20 = vld [vmem:[#allocation5 + $0x48] sm:$0xff]  ;;  %v85_v22 = vld [vmem:[#allocation5 + $0x50] sm:$0xff]  ;;  %v86_v23 = vld [vmem:[#allocation5 + $0x58] sm:$0xff]  ;;  %s791_s12 = scalar_lea.vmem %s403_s2, 128  ;;  %p796_p3 = scmp.lt.s32.totalorder %s403_s2, %s403_s2 }
  0x2b   :  { %627 = vmatprep.subr.bf16.mxu0 %v825_v2  ;;  %675 = vmatprep.subr.bf16.mxu1 %v825_v2  ;;  %v637_v21 = vpack.c.bf16 %v84_v20, %v83_v19  ;;  %v640_v24 = vpack.c.bf16 %v86_v23, %v85_v22  ;;  %v87_v25 = vld [vmem:[#allocation5 + $0x60] sm:$0xff]  ;;  %v88_v26 = vld [vmem:[#allocation5 + $0x68] sm:$0xff]  ;;  %v89_v28 = vld [vmem:[#allocation5 + $0x70] sm:$0xff]  ;;  %p792_p2 = scmp.ne.s32.totalorder %s403_s2, %s791_s12  ;;  %p797_p4 = scmp.lt.s32.totalorder %s791_s12, %s791_s12 }
  0x2c   :  { %516 = vmatprep.mubr.msk.f32.mxu0 %vm828_vm0, %v829_v17  ;;  %586 = vmatprep.mubr.msk.f32.mxu1 %vm828_vm0, %v829_v17  ;;  %v643_v27 = vpack.c.bf16 %v88_v26, %v87_v25  ;;  %v90_v29 = vld [vmem:[#allocation5 + $0x78] sm:$0xff]  ;;  %v59_v35 = vld [vmem:[#allocation2] sm:$0xff]  ;;  %v60_v36 = vld [vmem:[#allocation2 + $0x8] sm:$0xff] }
  0x2d   :  { %739 = vset.pattern.permute.xlu1 %v826_v12  ;;  %737 = vset.pattern.permute.xlu0 %v827_v13  ;;  %v646_v30 = vpack.c.bf16 %v90_v29, %v89_v28  ;;  %v649_v39 = vpack.c.bf16 %v60_v36, %v59_v35  ;;  %v61_v46 = vld [vmem:[#allocation2 + $0x10] sm:$0xff]  ;;  %v62_v47 = vld [vmem:[#allocation2 + $0x18] sm:$0xff]  ;;  %v63_v49 = vld [vmem:[#allocation2 + $0x20] sm:$0xff]  ;;  %p798_p5 = por %p797_p4, %p796_p3 }
  0x2e   :  { %238 = vperm.xlu1 %739, %v45_v3   ;;  %53 = vperm.xlu0 %737, %v45_v3   ;;  %v652_v48 = vpack.c.bf16 %v62_v47, %v61_v46  ;;  %v64_v50 = vld [vmem:[#allocation2 + $0x28] sm:$0xff]  ;;  %v65_v52 = vld [vmem:[#allocation2 + $0x30] sm:$0xff]  ;;  %v66_v53 = vld [vmem:[#allocation2 + $0x38] sm:$0xff] }
  0x2f   :  { %629 = vmatpush3.bf16.msra.mxu0 %v628_v9  ;;  %677 = vmatpush3.bf16.msra.mxu1 %v628_v9  ;;  %v655_v51 = vpack.c.bf16 %v64_v50, %v63_v49  ;;  %v658_v54 = vpack.c.bf16 %v66_v53, %v65_v52  ;;  %v67_v55 = vld [vmem:[#allocation2 + $0x40] sm:$0xff]  ;;  %v68_v56 = vld [vmem:[#allocation2 + $0x48] sm:$0xff]  ;;  %v69_v58 = vld [vmem:[#allocation2 + $0x50] sm:$0xff]  ;;  %p799_p6 = pnand %p798_p5, %p792_p2 }
  0x30   :  { %630 = vmatprep.subr.bf16.mxu0 %v825_v2  ;;  %678 = vmatprep.subr.bf16.mxu1 %v825_v2  ;;  %v661_v57 = vpack.c.bf16 %v68_v56, %v67_v55  ;;  %v70_v59 = vld [vmem:[#allocation2 + $0x58] sm:$0xff]  ;;  %v71_v61 = vld [vmem:[#allocation2 + $0x60] sm:$0xff]  ;;  %v72_v62 = vld [vmem:[#allocation2 + $0x68] sm:$0xff] }
  0x31   :  { %v664_v60 = vpack.c.bf16 %v70_v59, %v69_v58  ;;  %v667_v63 = vpack.c.bf16 %v72_v62, %v71_v61  ;;  %v73_v0 = vld [vmem:[#allocation2 + $0x70] sm:$0xff]  ;;  %v74_v1 = vld [vmem:[#allocation2 + $0x78] sm:$0xff] }
  0x32   :  { %740 = vset.pattern.permute.xlu0 %v826_v12  ;;  %v670_v3 = vpack.c.bf16 %v74_v1, %v73_v0 }
  0x33   :  { %632 = vmatpush3.bf16.msra.mxu0 %v631_v14  ;;  %680 = vmatpush3.bf16.msra.mxu1 %v631_v14 }
  0x34   :  { %633 = vmatprep.subr.bf16.mxu0 %v825_v2  ;;  %681 = vmatprep.subr.bf16.mxu1 %v825_v2 }
  0x37   :  { %635 = vmatpush3.bf16.msra.mxu0 %v634_v18  ;;  %683 = vmatpush3.bf16.msra.mxu1 %v634_v18 }
  0x38   :  { %636 = vmatprep.subr.bf16.mxu0 %v825_v2  ;;  %684 = vmatprep.subr.bf16.mxu1 %v825_v2 }
  0x3b   :  { %638 = vmatpush3.bf16.msra.mxu0 %v637_v21  ;;  %686 = vmatpush3.bf16.msra.mxu1 %v637_v21 }
  0x3c   :  { %639 = vmatprep.subr.bf16.mxu0 %v825_v2  ;;  %687 = vmatprep.subr.bf16.mxu1 %v825_v2 }
  0x3f   :  { %641 = vmatpush3.bf16.msra.mxu0 %v640_v24  ;;  %689 = vmatpush3.bf16.msra.mxu1 %v640_v24 }
  0x40   :  { %642 = vmatprep.subr.bf16.mxu0 %v825_v2  ;;  %690 = vmatprep.subr.bf16.mxu1 %v825_v2 }
  0x43   :  { %644 = vmatpush3.bf16.msra.mxu0 %v643_v27  ;;  %692 = vmatpush3.bf16.msra.mxu1 %v643_v27 }
  0x44   :  { %645 = vmatprep.subr.bf16.mxu0 %v825_v2  ;;  %693 = vmatprep.subr.bf16.mxu1 %v825_v2 }
  0x47   :  { %647 = vmatpush3.bf16.msra.mxu0 %v646_v30  ;;  %695 = vmatpush3.bf16.msra.mxu1 %v646_v30 }
  0x48   :  { %648 = vmatprep.subr.bf16.mxu0 %v825_v2  ;;  %696 = vmatprep.subr.bf16.mxu1 %v825_v2 }
  0xa8   :  { %v233_v33 = vpop.permute.xlu1 %232  ;;  %v48_v34 = vpop.permute.xlu0 %47 }
  0xa9   :  { %vm234_vm1 = vcmp.eq.s32.totalorder %v233_v33, %v44_v32  ;;  %vm49_vm2 = vcmp.eq.s32.totalorder %v48_v34, %v44_v32 }
  0xaa   :  { %v414_v40 = vsel %vm234_vm1, 1.0, %v829_v17  ;;  %v412_v41 = vsel %vm49_vm2, 1.0, %v829_v17 }
  0xad   :  { %v239_v37 = vpop.permute.xlu1 %238  ;;  %v54_v38 = vpop.permute.xlu0 %53 }
  0xae   :  { %vm240_vm3 = vcmp.eq.s32.totalorder %v239_v37, %v44_v32  ;;  %vm55_vm4 = vcmp.eq.s32.totalorder %v54_v38, %v44_v32 }
  0xaf   :  { %v415_v42 = vsel %vm240_vm3, 1.0, %v829_v17  ;;  %v413_v43 = vsel %vm55_vm4, 1.0, %v829_v17 }
  0xb0   :  { %v243_v44 = vsub.f32 %v414_v40, %v415_v42  ;;  %v58_v45 = vsub.f32 %v412_v41, %v413_v43 }
  0xb2   :  { %517 = vmatmul.mubr.f32.vlgmr.msra.gmra.mrb[0].mxu0 %v58_v45  ;;  %587 = vmatmul.mubr.f32.vlgmr.msra.gmra.mrb[0].mxu1 %v243_v44 }
  0xb3   :  { %650 = vmatpush3.bf16.msra.mxu0 %v649_v39  ;;  %698 = vmatpush3.bf16.msra.mxu1 %v649_v39 }
  0xb4   :  { %651 = vmatprep.subr.bf16.mxu0 %v825_v2  ;;  %699 = vmatprep.subr.bf16.mxu1 %v825_v2 }
  0xb5   :  { %551 = vmatprep.mubr.msk.f32.mxu0 %vm828_vm0, %v829_v17  ;;  %621 = vmatprep.mubr.msk.f32.mxu1 %vm828_vm0, %v829_v17 }
  0xb7   :  { %653 = vmatpush3.bf16.msra.mxu0 %v652_v48  ;;  %701 = vmatpush3.bf16.msra.mxu1 %v652_v48 }
  0xb8   :  { %654 = vmatprep.subr.bf16.mxu0 %v825_v2  ;;  %702 = vmatprep.subr.bf16.mxu1 %v825_v2 }
  0xbb   :  { %656 = vmatpush3.bf16.msra.mxu0 %v655_v51  ;;  %704 = vmatpush3.bf16.msra.mxu1 %v655_v51 }
  0xbc   :  { %657 = vmatprep.subr.bf16.mxu0 %v825_v2  ;;  %705 = vmatprep.subr.bf16.mxu1 %v825_v2 }
  0xbf   :  { %659 = vmatpush3.bf16.msra.mxu0 %v658_v54  ;;  %707 = vmatpush3.bf16.msra.mxu1 %v658_v54 }
  0xc0   :  { %660 = vmatprep.subr.bf16.mxu0 %v825_v2  ;;  %708 = vmatprep.subr.bf16.mxu1 %v825_v2 }
  0xc3   :  { %662 = vmatpush3.bf16.msra.mxu0 %v661_v57  ;;  %710 = vmatpush3.bf16.msra.mxu1 %v661_v57 }
  0xc4   :  { %663 = vmatprep.subr.bf16.mxu0 %v825_v2  ;;  %711 = vmatprep.subr.bf16.mxu1 %v825_v2 }
  0xc7   :  { %665 = vmatpush3.bf16.msra.mxu0 %v664_v60  ;;  %713 = vmatpush3.bf16.msra.mxu1 %v664_v60 }
  0xc8   :  { %666 = vmatprep.subr.bf16.mxu0 %v825_v2  ;;  %714 = vmatprep.subr.bf16.mxu1 %v825_v2 }
  0xcb   :  { %668 = vmatpush3.bf16.msra.mxu0 %v667_v63  ;;  %716 = vmatpush3.bf16.msra.mxu1 %v667_v63 }
  0xcc   :  { %669 = vmatprep.subr.bf16.mxu0 %v825_v2  ;;  %717 = vmatprep.subr.bf16.mxu1 %v825_v2 }
  0xcf   :  { %671 = vmatpush3.bf16.msra.mxu0 %v670_v3  ;;  %719 = vmatpush3.bf16.msra.mxu1 %v670_v3 }
  0xd2   :  { %552 = vmatmul.mubr.f32.vlgmr.msra.gmra.mrb[0].mxu0 %v58_v45  ;;  %622 = vmatmul.mubr.f32.vlgmr.msra.gmra.mrb[0].mxu1 %v243_v44 }
 0x1a5   :  { %v227_v4 = vpop.f32.mrb[0].mxu0  ;;  %v380_v5 = vpop.f32.mrb[0].mxu1 }
 0x1a6   :  { %v384_v6 = vmin.f32 %v227_v4, 60.0  ;;  %v387_v7 = vmin.f32 %v380_v5, 60.0  ;;  %v553_v8 = vpop.f32.mrb[1].mxu0  ;;  %v623_v9 = vpop.f32.mrb[1].mxu1 }
 0x1a8   :  { %v385_v10 = vmul.f32 1.442695, %v384_v6  ;;  %v388_v11 = vmul.f32 1.442695, %v387_v7 }
 0x1aa   :  { %741 = vpow2.f32 %v385_v10 }
 0x1ab   :  { %743 = vpow2.f32 %v388_v11 }
 0x1b4   :  { %v742_v12 = vpop.eup %741 }
 0x1b5   :  { %v744_v13 = vpop.eup %743  ;;  %v390_v14 = vadd.f32 1.0, %v742_v12 }
 0x1b6   :  { %v391_v15 = vadd.f32 1.0, %v744_v13 }
 0x1b8   :  { %v392_v16 = vmul.f32 %v391_v15, %v390_v14 }
 0x1ba   :  { %745 = vrcp.f32 %v392_v16 }
 0x1c4   :  { %v746_v2 = vpop.eup %745 }
 0x1c5   :  { %395 = vst [vmem:[#allocation7] sm:$0xff] %v746_v2 }
 0x1c6   :  { %802 = shalt.err (!%p799_p6)
}
 0x1c7   :  { %s803_s15 = scalar_lea.hbm %s937_s3, 128 }
 0x1c8   :  { %p804_p7 = scmp.ne.s32.totalorder %s937_s3, %s803_s15  ;;  %p807_p8 = scmp.lt.u32.totalorder %s803_s15, %s937_s3 }
 0x1ca   :  { %p809_p9 = pnand %p807_p8, %p804_p7 }
 0x1cc   :  { %812 = shalt.err (!%p809_p9)
}
 0x1cd   :  { %405 = dma.vmem_to_hbm [thread:$0]  %s403_s2, 128, %s937_s3, [#allocation4]  }
 0x1ce   :  { %817 = dma.done.wait [#allocation4], 128  }
 0x1cf   :  { %818 = vsyncadd [#allocation4], 4294967168 }
 0x1d0   :  { %409 = vsyncpa [#allocation3], 1 }
 0x1d1   :  { %410 = vsyncpa [#allocation6], 1 }
 0x1d2   :  { %411 = vsyncpa [#allocation4], 1 }

</bundles_post_ra>
